<compile_context>
chip_gen: v5e
topology: v5e:2x2
jax: 0.10.0
libtpu: 0.0.40
codegen_flags: <defaults>
</compile_context>

<pallas_src>
import functools

import jax
import jax.numpy as jnp
from jax.experimental import pallas as pl
from jax.experimental.pallas import tpu as pltpu


def _round_up(x, m):
    return (x + m - 1) // m * m


# ----------------------------------------------------------------------------
# Pallas kernels
# ----------------------------------------------------------------------------
def _conv_bn_kernel(relu, has_res, p_ref, w_ref, s_ref, b_ref, *rest):
    # (TM, K) bf16 @ (K, TN) bf16 on the MXU with f32 accumulation, then the
    # folded-BN affine in f32, optional residual add, optional ReLU.
    if has_res:
        r_ref, o_ref = rest
    else:
        (o_ref,) = rest
    acc = jnp.dot(p_ref[...], w_ref[...], preferred_element_type=jnp.float32)
    y = acc * s_ref[...] + b_ref[...]
    if has_res:
        y = y + r_ref[...].astype(jnp.float32)
    if relu:
        y = jnp.maximum(y, 0.0)
    o_ref[...] = y.astype(o_ref.dtype)


def _maxpool_kernel(w_ref, o_ref):
    # windows block: (9, TM, C) -> elementwise max over the 9 taps (VPU).
    o_ref[...] = jnp.max(w_ref[...], axis=0)


# ----------------------------------------------------------------------------
# Pallas wrappers
# ----------------------------------------------------------------------------
def _matmul_bn(patches, w2, scale, bias, *, relu, residual=None):
    """patches (M,K) bf16, w2 (K,Cout) bf16, scale/bias (Cout,) f32 ->
    bf16 (M, Cout) = [relu]( (patches @ w2) * scale + bias [+ residual] )."""
    M, K = patches.shape
    Cout = w2.shape[1]

    # Adaptive tiles: do not pad tiny late-layer matmuls up to 128/256 rows;
    # 256-wide output tiles fill the 2x256x256 MXU on v6e/v7x for Cout >= 256.
    TM = min(256, _round_up(M, 8))
    TN = min(256, Cout)
    Mpad = _round_up(M, TM)
    if Mpad != M:
        patches = jnp.pad(patches, ((0, Mpad - M), (0, 0)))
        if residual is not None:
            residual = jnp.pad(residual, ((0, Mpad - M), (0, 0)))

    has_res = residual is not None
    in_specs = [
        pl.BlockSpec((TM, K), lambda i, j: (i, 0)),
        pl.BlockSpec((K, TN), lambda i, j: (0, j)),   # Cout-sliced weight block
        pl.BlockSpec((1, TN), lambda i, j: (0, j)),
        pl.BlockSpec((1, TN), lambda i, j: (0, j)),
    ]
    args = [
        patches,
        w2,
        scale.reshape(1, Cout).astype(jnp.float32),
        bias.reshape(1, Cout).astype(jnp.float32),
    ]
    if has_res:
        in_specs.append(pl.BlockSpec((TM, TN), lambda i, j: (i, j)))
        args.append(residual)

    out = pl.pallas_call(
        functools.partial(_conv_bn_kernel, relu, has_res),
        out_shape=jax.ShapeDtypeStruct((Mpad, Cout), jnp.bfloat16),
        grid=(Mpad // TM, Cout // TN),
        in_specs=in_specs,
        out_specs=pl.BlockSpec((TM, TN), lambda i, j: (i, j)),
        compiler_params=pltpu.CompilerParams(
            dimension_semantics=("parallel", "parallel"),
            # per-step footprint is ~10 MiB double-buffered; 32 MiB is safe on
            # every generation (v7x has only 64 MiB physical VMEM per TC).
            vmem_limit_bytes=32 * 1024 * 1024,
        ),
    )(*args)
    return out[:M]


def _extract_patches(x, kh, kw, stride, pad):
    # x: (N, H, W, C) bf16 -> (N, Ho, Wo, kh*kw*C), patch feature order (dh, dw, c)
    N, H, W, C = x.shape
    xp = jnp.pad(x, ((0, 0), (pad, pad), (pad, pad), (0, 0)))
    Ho = (H + 2 * pad - kh) // stride + 1
    Wo = (W + 2 * pad - kw) // stride + 1
    views = []
    for di in range(kh):
        for dj in range(kw):
            views.append(
                xp[:, di:di + stride * (Ho - 1) + 1:stride,
                   dj:dj + stride * (Wo - 1) + 1:stride, :])
    p = jnp.stack(views, axis=3)  # (N, Ho, Wo, kh*kw, C)
    return p.reshape(N, Ho, Wo, kh * kw * C), Ho, Wo


def _fold_bn(bn, eps=1e-5):
    scale = bn["gamma"] / jnp.sqrt(bn["var"] + eps)
    bias = bn["beta"] - bn["mean"] * scale
    return scale, bias


def _conv_bn(x, w_oihw, bn, stride, pad, relu, residual=None, pad_lanes=False):
    """Conv + folded BN (+ optional fused residual add) (+ optional ReLU).
    x: NHWC bf16, w: (Cout, Cin, kh, kw) f32 like PyTorch.  Returns NHWC bf16.
    pad_lanes: zero-pad K and Cout up to 128 multiples (stem conv: K=147,
    Cout=64) for lane-dense loads/stores; sliced back afterwards."""
    N, H, W, Cin = x.shape
    Cout, Cin2, kh, kw = w_oihw.shape
    assert Cin == Cin2
    scale, bias = _fold_bn(bn)

    patches, Ho, Wo = _extract_patches(x, kh, kw, stride, pad)
    K = kh * kw * Cin
    # reorder weight to match patch feature order (dh, dw, cin); bf16 for MXU
    w2 = jnp.transpose(w_oihw, (2, 3, 1, 0)).reshape(K, Cout).astype(jnp.bfloat16)

    if pad_lanes:
        Kp = _round_up(K, 128)
        if Kp != K:
            patches = jnp.pad(patches, ((0, 0), (0, 0), (0, 0), (0, Kp - K)))
            w2 = jnp.pad(w2, ((0, Kp - K), (0, 0)))
            K = Kp
        Cp = _round_up(Cout, 128)
        if Cp != Cout:
            w2 = jnp.pad(w2, ((0, 0), (0, Cp - Cout)))
            scale = jnp.pad(scale, (0, Cp - Cout))
            bias = jnp.pad(bias, (0, Cp - Cout))

    M = N * Ho * Wo
    res2 = None if residual is None else residual.reshape(M, Cout)
    out = _matmul_bn(patches.reshape(M, K), w2, scale, bias,
                     relu=relu, residual=res2)
    if out.shape[1] != Cout:
        out = out[:, :Cout]
    return out.reshape(N, Ho, Wo, Cout)


def _maxpool_3x3_s2(x):
    # PyTorch MaxPool2d(kernel_size=3, stride=2, padding=1); x: NHWC bf16
    N, H, W, C = x.shape
    xp = jnp.pad(x, ((0, 0), (1, 1), (1, 1), (0, 0)),
                 constant_values=-jnp.inf)
    Ho = (H + 2 - 3) // 2 + 1
    Wo = (W + 2 - 3) // 2 + 1
    views = [
        xp[:, di:di + 2 * (Ho - 1) + 1:2, dj:dj + 2 * (Wo - 1) + 1:2, :]
        for di in range(3) for dj in range(3)
    ]
    M = N * Ho * Wo
    wins = jnp.stack(views, axis=0).reshape(9, M, C)

    TM = min(512, _round_up(M, 8))
    Mpad = _round_up(M, TM)
    if Mpad != M:
        wins = jnp.pad(wins, ((0, 0), (0, Mpad - M), (0, 0)))

    out = pl.pallas_call(
        _maxpool_kernel,
        out_shape=jax.ShapeDtypeStruct((Mpad, C), x.dtype),
        grid=(Mpad // TM,),
        in_specs=[pl.BlockSpec((9, TM, C), lambda i: (0, i, 0))],
        out_specs=pl.BlockSpec((TM, C), lambda i: (i, 0)),
        compiler_params=pltpu.CompilerParams(
            dimension_semantics=("parallel",)),
    )(wins)
    return out[:M].reshape(N, Ho, Wo, C)


# ----------------------------------------------------------------------------
# ResNet-18 structure
# ----------------------------------------------------------------------------
def _init_conv(key, cout, cin, k):
    fan_in = cin * k * k
    return jax.random.normal(key, (cout, cin, k, k),
                             dtype=jnp.float32) * (2.0 / fan_in) ** 0.5


def _init_bn(key, c):
    k1, k2, k3, k4 = jax.random.split(key, 4)
    return dict(
        gamma=1.0 + 0.1 * jax.random.normal(k1, (c,), jnp.float32),
        beta=0.05 * jax.random.normal(k2, (c,), jnp.float32),
        mean=0.05 * jax.random.normal(k3, (c,), jnp.float32),
        var=0.9 + 0.2 * jax.random.uniform(k4, (c,), jnp.float32),
    )


def _init_block(key, cin, cout, stride):
    ks = jax.random.split(key, 6)
    p = dict(
        stride=stride,
        conv1_w=_init_conv(ks[0], cout, cin, 3), bn1=_init_bn(ks[1], cout),
        conv2_w=_init_conv(ks[2], cout, cout, 3), bn2=_init_bn(ks[3], cout),
    )
    if stride != 1 or cin != cout:
        p["down_w"] = _init_conv(ks[4], cout, cin, 1)
        p["down_bn"] = _init_bn(ks[5], cout)
    return p


def init_resnet18_params(key):
    ks = jax.random.split(key, 10)
    params = dict(conv1_w=_init_conv(ks[0], 64, 3, 7), bn1=_init_bn(ks[1], 64))
    widths = [64, 128, 256, 512]
    cin, ki = 64, 2
    for li, w in enumerate(widths):
        blocks = []
        for b in range(2):
            stride = 2 if (b == 0 and li > 0) else 1
            blocks.append(_init_block(ks[ki], cin, w, stride))
            ki += 1
            cin = w
        params[f"layer{li + 1}"] = blocks
    return params


def _basic_block(x, p):
    out1 = _conv_bn(x, p["conv1_w"], p["bn1"],
                    stride=p["stride"], pad=1, relu=True)
    if "down_w" in p:
        identity = _conv_bn(x, p["down_w"], p["down_bn"],
                            stride=p["stride"], pad=0, relu=False)
    else:
        identity = x
    # conv2 + BN + residual add + ReLU fused into one Pallas kernel epilogue
    return _conv_bn(out1, p["conv2_w"], p["bn2"],
                    stride=1, pad=1, relu=True, residual=identity)


def resnet_conv_forward(x_nchw, params, n_blocks=4):
    """Equivalent of ResNetConv.forward. Input NCHW f32, output NCHW f32."""
    x = jnp.transpose(x_nchw, (0, 2, 3, 1)).astype(jnp.bfloat16)  # -> NHWC bf16
    x = _conv_bn(x, params["conv1_w"], params["bn1"],
                 stride=2, pad=3, relu=True, pad_lanes=True)
    x = _maxpool_3x3_s2(x)
    for li in range(1, 5):
        if n_blocks >= li:
            for blk in params[f"layer{li}"]:
                x = _basic_block(x, blk)
    return jnp.transpose(x, (0, 3, 1, 2)).astype(jnp.float32)  # -> NCHW f32


if __name__ == "__main__":
    key = jax.random.PRNGKey(0)
    kx, kp = jax.random.split(key)
    # small input consistent with ResNet conv1 (3 input channels); total stride 32
    x = jax.random.normal(kx, (2, 3, 64, 64), dtype=jnp.float32)
    params = init_resnet18_params(kp)

    out = resnet_conv_forward(x, params, n_blocks=4)
    out = jax.block_until_ready(out)

    assert out.shape == (2, 512, 2, 2), out.shape
    assert out.dtype == jnp.float32
    assert bool(jnp.all(jnp.isfinite(out)))
    print("KERNEL_OK")
</pallas_src>

<mosaic_0001>
module attributes {stable_mosaic.version = 11 : i64} {
  func.func @_conv_bn_kernel(%arg0: i32, %arg1: i32, %arg2: memref<256x256xbf16, #tpu.memory_space<vmem>>, %arg3: memref<256x128xbf16, #tpu.memory_space<vmem>>, %arg4: memref<1x128xf32, #tpu.memory_space<vmem>>, %arg5: memref<1x128xf32, #tpu.memory_space<vmem>>, %arg6: memref<256x128xbf16, #tpu.memory_space<vmem>>) attributes {dimension_semantics = [#tpu.dimension_semantics<parallel>, #tpu.dimension_semantics<parallel>], iteration_bounds = array<i64: 8, 1>, scalar_prefetch = 0 : i64, scratch_operands = 0 : i64, tpu.core_type = #tpu.core_type<tc>, window_params = [{transform_indices = @transform_0, window_bounds = array<i64: 256, 256>}, {transform_indices = @transform_1, window_bounds = array<i64: 256, 128>}, {transform_indices = @transform_2, window_bounds = array<i64: 1, 128>}, {transform_indices = @transform_3, window_bounds = array<i64: 1, 128>}, {transform_indices = @transform_4, window_bounds = array<i64: 256, 128>}]} {
    %c0 = arith.constant 0 : index
    %c0_0 = arith.constant 0 : index
    %0 = vector.load %arg2[%c0, %c0_0] : memref<256x256xbf16, #tpu.memory_space<vmem>>, vector<256x256xbf16>
    %c0_1 = arith.constant 0 : index
    %c0_2 = arith.constant 0 : index
    %1 = vector.load %arg3[%c0_1, %c0_2] : memref<256x128xbf16, #tpu.memory_space<vmem>>, vector<256x128xbf16>
    %cst = arith.constant dense<0.000000e+00> : vector<256x128xf32>
    %2 = tpu.matmul %0, %1, %cst {dimension_numbers = #tpu.dot_dimension_numbers<[1], [0], [0], [1], [0, 0, 1, 1], [], []>} : vector<256x256xbf16>, vector<256x128xbf16>, vector<256x128xf32> -> vector<256x128xf32>
    %c0_3 = arith.constant 0 : index
    %c0_4 = arith.constant 0 : index
    %3 = vector.load %arg4[%c0_3, %c0_4] : memref<1x128xf32, #tpu.memory_space<vmem>>, vector<1x128xf32>
    %4 = vector.broadcast %3 : vector<1x128xf32> to vector<256x128xf32>
    %5 = arith.mulf %2, %4 : vector<256x128xf32>
    %c0_5 = arith.constant 0 : index
    %c0_6 = arith.constant 0 : index
    %6 = vector.load %arg5[%c0_5, %c0_6] : memref<1x128xf32, #tpu.memory_space<vmem>>, vector<1x128xf32>
    %7 = vector.broadcast %6 : vector<1x128xf32> to vector<256x128xf32>
    %8 = arith.addf %5, %7 : vector<256x128xf32>
    %cst_7 = arith.constant 0.000000e+00 : f32
    %9 = vector.broadcast %cst_7 : f32 to vector<256x128xf32>
    %10 = arith.maximumf %8, %9 : vector<256x128xf32>
    %11 = arith.truncf %10 : vector<256x128xf32> to vector<256x128xbf16>
    %c0_8 = arith.constant 0 : index
    %c0_9 = arith.constant 0 : index
    %12 = vector.load %arg6[%c0_8, %c0_9] : memref<256x128xbf16, #tpu.memory_space<vmem>>, vector<256x128xbf16>
    tpu.vector_store %arg6[%c0_8, %c0_9], %11 {strides = array<i32>} : memref<256x128xbf16, #tpu.memory_space<vmem>>, vector<256x128xbf16>,
    return
  }
  func.func @transform_0(%arg0: i32, %arg1: i32) -> (i32, i32) {
    %c0_i32 = arith.constant 0 : i32
    %c0_i32_0 = arith.constant 0 : i32
    return %arg0, %c0_i32 : i32, i32
  }
  func.func @transform_1(%arg0: i32, %arg1: i32) -> (i32, i32) {
    %c0_i32 = arith.constant 0 : i32
    %c0_i32_0 = arith.constant 0 : i32
    return %c0_i32, %arg1 : i32, i32
  }
  func.func @transform_2(%arg0: i32, %arg1: i32) -> (i32, i32) {
    %c0_i32 = arith.constant 0 : i32
    %c0_i32_0 = arith.constant 0 : i32
    return %c0_i32, %arg1 : i32, i32
  }
  func.func @transform_3(%arg0: i32, %arg1: i32) -> (i32, i32) {
    %c0_i32 = arith.constant 0 : i32
    %c0_i32_0 = arith.constant 0 : i32
    return %c0_i32, %arg1 : i32, i32
  }
  func.func @transform_4(%arg0: i32, %arg1: i32) -> (i32, i32) {
    %c0_i32 = arith.constant 0 : i32
    return %arg0, %arg1 : i32, i32
  }
}

</mosaic_0001>

<bundles_post_ra>
// kernel: tpu_custom_call.1
= control target key start
LH: loop header
LB: loop body
LE: loop exit
PB: predicated region body
PF: predicated region fallthrough
CT: control target
= control target key end

     0   :  { %s2031_s0 = inlined_call_operand.hbm [shape: bf16[2048,256], index: 0, kind: input, shape index: {}]   ;;  %s2032_s1 = inlined_call_operand.hbm [shape: bf16[256,128], index: 1, kind: input, shape index: {}]   ;;  %s2033_s2 = inlined_call_operand.vmem [shape: f32[1,128], index: 2, kind: input, shape index: {}]   ;;  %s2034_s3 = inlined_call_operand.vmem [shape: f32[1,128], index: 3, kind: input, shape index: {}]   ;;  %s2035_s4 = inlined_call_operand.hbm [shape: bf16[2048,128], index: 4, kind: output, shape index: {}]  }
   0x1   :  { %2037 = sst [smem:[#allocation12_spill]] %s2032_s1 }
   0x2   :  { %9 = vsyncpa [#allocation3], 0 }
   0x3   :  { %11 = vsyncpa [#allocation3 + $0x1], 0 }
   0x4   :  { %12 = vsyncpa [#allocation6], 0 }
   0x5   :  { %13 = vsyncpa [#allocation4], 0 }
   0x6   :  { %15 = vsyncpa [#allocation4 + $0x1], 0  ;;  %s1724_s15 = smov 0   ;;  %s1726_s16 = smov 0  }
   0x7   :  { %s1728_s17 = smov 0   ;;  %s1730_s18 = smov 0  }
   0x8   :  { %s1732_s19 = smov 0   ;;  %s1734_s20 = smov 0  }
   0x9 LB: > { %s1089_s21 = sadd.s32 4294967295, %s1690_s20   ;;  %s1090_s22 = sadd.s32 4294967294, %s1690_s20   ;;  %s1690_s20 = sphi %s1734_s20, %s21_s20   ;;  %s1686_s19 = sphi %s1732_s19, %s2052_s19   ;;  %s1682_s18 = sphi %s1730_s18, %s2051_s18   ;;  %s1678_s17 = sphi %s1728_s17, %s2050_s17   ;;  %s1674_s16 = sphi %s1726_s16, %s2049_s16   ;;  %s1670_s15 = sphi %s1724_s15, %s2048_s15  }
   0xa   : > { %p53_p0 = scmp.ne.s32.totalorder %s1674_s16, %s1670_s15  ;;  %p1758_p1 = scmp.eq.s32.totalorder %s1089_s21, 0 }
   0xb   : > { %p1762_p2 = scmp.eq.s32.totalorder %s1089_s21, 7  ;;  %p163_p3 = scmp.eq.s32.totalorder %s1090_s22, 7 }
   0xc   : > { %p1768_p4 = por %p1758_p1, %p53_p0  ;;  %p1091_p5 = scmp.ge.s32.totalorder %s1690_s20, 1 }
   0xd   : > { %p1773_p6 = por %p163_p3, %p53_p0  ;;  %p170_p7 = scmp.lt.s32.totalorder %s1690_s20, 9 }
   0xe   : > { %s2042_s1 = sld [smem:[#allocation12_spill]]  ;;  %s1692_s5 = smov [#allocation5]  }
   0xf   : > { %p1781_p8 = pnand %p1091_p5, %p170_p7  ;;  %s185_s6 = sshll.u32 %s1692_s5, 4  ;;  %s186_s6 = int_to_ptr.vmem [resolvable:$true] %s185_s6 }
  0x10   : > { %s1693_s7 = smov 64   ;;  %s1694_s8 = smov 4  }
  0x11   : > { %p1471_p9 = pneg %p1781_p8  ;;  %s33_s9 = sadd.s32 1, %s1686_s19 }
  0x12   : > { %p35_p11 = scmp.ge.s32.totalorder %s33_s9, 8  ;;  %s40_s10 = sadd.s32 1, %s1678_s17 }
  0x13   : > { %p1472_p10 = pnand %p1471_p9, %p1758_p1  ;;  %p47_p12 = scmp.ne.s32.totalorder %s1678_s17, %s1674_s16 }
  0x14   : > { %s183_s29 = sshll.u32 %s2042_s1, 4  ;;  %p48_p13 = scmp.eq.s32.totalorder %s1690_s20, 0  ;;  %s184_s29 = int_to_ptr.hbm [resolvable:$true] %s183_s29 }
  0x15   : > { %1474 = dma.hbm_to_vmem [thread:$0]  (!%p1472_p10), %s184_s29, 2048, %s186_s6, [#allocation6], %s1693_s7, %s1693_s7, %s1694_s8  }
  0x16   : > { %s2054_s9 = smov (%p35_p11, %s33_s9), 0  ;;  %p1796_p0 = por %p48_p13, %p47_p12 }
  0x17   : > { %2044 = sst [smem:[#allocation11_spill]] %s2054_s9  ;;  %p1802_p3 = por %p1762_p2, %p47_p12 }
  0x18   : > { %s37_s13 = ssub.s32 %s1686_s19, %s2054_s9  ;;  %p1484_p5 = scmp.lt.s32.totalorder %s1690_s20, 8 }
  0x19   : > { %p38_p7 = scmp.eq.s32.totalorder %s37_s13, 0  ;;  %s211_s14 = sand.u32 1, %s1678_s17  }
  0x1a   : > { %s1096_s21 = sshll.u32 %s211_s14, 8  ;;  %s1302_s27 = sshll.u32 %s1686_s19, 8 }
  0x1b   : > { %s1811_s22 = scalar_select %p38_p7, %s1678_s17, %s40_s10  }
  0x1c   : > { %s221_s5 = scalar_lea.hbm %s2031_s0, %s1302_s27  ;;  %s215_s6 = scalar_lea.vmem [#allocation2], %s1096_s21 }
  0x1d   : > { %s224_s7 = sshll.u32 %s215_s6, 4  ;;  %s222_s24 = sshll.u32 %s221_s5, 4  ;;  %s225_s7 = int_to_ptr.vmem [resolvable:$true] %s224_s7  ;;  %s223_s24 = int_to_ptr.hbm [resolvable:$true] %s222_s24 }
  0x1e   : > { %p1476_p2 = pnand %p1484_p5, %p1796_p0  ;;  %s212_s8 = scalar_lea.sflag [#allocation3], %s211_s14 }
  0x1f   : > { %s1695_s1 = smov 128   ;;  %s1696_s9 = smov 8  }
  0x20   : > { %1478 = dma.hbm_to_vmem [thread:$0]  (!%p1476_p2), %s223_s24, 4096, %s225_s7, %s212_s8, %s1695_s1, %s1695_s1, %s1696_s9  }
  0x21   : > { %236 = sbr.rel (%p1781_p8) target bundleno = 340 (0x154), region = 36  ;;  %s1822_s10 = sand.u32 (!%p1781_p8), 1, %s1674_s16  }
  0x22   : > { %s1101_s13 = sshll.u32 (!%p1781_p8), %s1822_s10, 8  ;;  %s239_s21 = scalar_lea.sflag (!%p1781_p8), [#allocation3], %s1822_s10 }
  0x23   : > { %s1826_s27 = scalar_lea.vmem (!%p1781_p8), [#allocation2], %s1101_s13 }
  0x26   : > { %1657 = dma.done.wait (%p1768_p4), %s239_s21, 4096  }
  0x27   : > { %1659 = vsyncadd (%p1768_p4), %s239_s21, 4294963200 }
  0x28   : > { %1661 = dma.done.wait (%p1758_p1), [#allocation6], 2048  }
  0x29   : > { %1663 = vsyncadd (%p1758_p1), [#allocation6], 4294965248  ;;  %v1342_v0 = vld [vmem:[#allocation5 + $0x38] sm:$0xff]  ;;  %v1341_v2 = vld [vmem:[#allocation5 + $0x30] sm:$0xff]  ;;  %s1103_s9 = sshll.u32 %s1822_s10, 7  ;;  %s1351_s14 = sshll.u32 %s1682_s18, 7 }
  0x2a   : > { %v1350_v1 = vld [vmem:[#allocation5 + $0x78] sm:$0xff]  ;;  %607 = vmatpush.bf16.msra.mxu0 %v1342_v0  ;;  %1447 = vmatpush.bf16.msra.mxu2 %v1342_v0  ;;  %v1349_v3 = vld [vmem:[#allocation5 + $0x70] sm:$0xff]  ;;  %v1340_v4 = vld [vmem:[#allocation5 + $0x28] sm:$0xff]  ;;  %s1918_s11 = scalar_lea.vmem [#allocation7], %s1103_s9  ;;  %s966_s5 = scalar_lea.hbm %s2035_s4, %s1351_s14 }
  0x2b   : > { %696 = vmatpush.bf16.msra.mxu1 %v1350_v1  ;;  %1455 = vmatpush.bf16.msra.mxu3 %v1350_v1  ;;  %v1348_v5 = vld [vmem:[#allocation5 + $0x68] sm:$0xff]  ;;  %v1339_v6 = vld [vmem:[#allocation5 + $0x20] sm:$0xff]  ;;  %v1338_v8 = vld [vmem:[#allocation5 + $0x18] sm:$0xff]  ;;  %s967_s18 = sshll.u32 %s1918_s11, 4  ;;  %s969_s6 = sshll.u32 %s966_s5, 4  ;;  %s968_s18 = int_to_ptr.vmem [resolvable:$true] %s967_s18  ;;  %s970_s6 = int_to_ptr.hbm [resolvable:$true] %s969_s6 }
  0x2c   : > { %v1347_v7 = vld [vmem:[#allocation5 + $0x60] sm:$0xff]  ;;  %v1346_v9 = vld [vmem:[#allocation5 + $0x58] sm:$0xff]  ;;  %v1337_v10 = vld [vmem:[#allocation5 + $0x10] sm:$0xff]  ;;  %s954_s7 = scalar_lea.sflag [#allocation4], %s1822_s10  ;;  %s1618_s24 = sshra.s32 %s970_s6, 4  ;;  %s1619_s24 = int_to_ptr.hbm [resolvable:$true] %s1618_s24 }
  0x2d   : > { %v1345_v11 = vld [vmem:[#allocation5 + $0x50] sm:$0xff]  ;;  %v1336_v12 = vld [vmem:[#allocation5 + $0x8] sm:$0xff]  ;;  %v1335_v14 = vld [vmem:[#allocation5] sm:$0xff]  ;;  %s1620_s8 = scalar_lea.hbm %s1619_s24, 128  ;;  %p1625_p9 = scmp.lt.s32.totalorder %s1619_s24, %s2035_s4 }
  0x2e   : > { %608 = vmatpush.bf16.msra.mxu0 %v1341_v2  ;;  %1448 = vmatpush.bf16.msra.mxu2 %v1341_v2  ;;  %v1344_v13 = vld [vmem:[#allocation5 + $0x48] sm:$0xff]  ;;  %v1343_v15 = vld [vmem:[#allocation5 + $0x40] sm:$0xff]  ;;  %v1114_v28 = vld [vmem:[%s1826_s27 + $0x10] sm:$0xf]  ;;  %p1621_p1 = scmp.ne.s32.totalorder %s1619_s24, %s1620_s8 }
  0x2f   : > { %697 = vmatpush.bf16.msra.mxu1 %v1349_v3  ;;  %1456 = vmatpush.bf16.msra.mxu3 %v1349_v3  ;;  %v1106_v16 = vld [vmem:[%s1826_s27] sm:$0xf]  ;;  %v1304_v17 = vld [vmem:[%s1826_s27 + $0x4] sm:$0xf0]  ;;  %v1303_v20 = vld [vmem:[%s1826_s27 + $0x4] sm:$0xf] }
  0x30   : > { %v1170_v18 = vld [vmem:[%s1826_s27 + $0x80] sm:$0xf]  ;;  %v1320_v19 = vld [vmem:[%s1826_s27 + $0x84] sm:$0xf0]  ;;  %v1108_v21 = vld [vmem:[%s1826_s27 + $0x8] sm:$0xf0]  ;;  %v1107_v24 = vor.u32 %v1304_v17, %v1106_v16  ;;  %p1622_p4 = pnand %p1621_p1, %p1802_p3 }
  0x31   : > { %v1319_v22 = vld [vmem:[%s1826_s27 + $0x84] sm:$0xf]  ;;  %v1172_v23 = vld [vmem:[%s1826_s27 + $0x88] sm:$0xf0]  ;;  %v1171_v25 = vor.u32 %v1320_v19, %v1170_v18  ;;  %v1111_v26 = vor.u32 %v1303_v20, %v1108_v21  ;;  %v1306_v29 = vld [vmem:[%s1826_s27 + $0x14] sm:$0xf0] }
  0x32   : > { %609 = vmatpush.bf16.msra.mxu0 %v1340_v4  ;;  %1449 = vmatpush.bf16.msra.mxu2 %v1340_v4  ;;  %v1175_v27 = vor.u32 %v1319_v22, %v1172_v23  ;;  %v1178_v30 = vld [vmem:[%s1826_s27 + $0x90] sm:$0xf]  ;;  %v1322_v31 = vld [vmem:[%s1826_s27 + $0x94] sm:$0xf0]  ;;  %v1305_v32 = vld [vmem:[%s1826_s27 + $0x14] sm:$0xf]  ;;  %v1115_v36 = vor.u32 %v1306_v29, %v1114_v28  ;;  %p1623_p8 = pneg %p1622_p4 }
  0x33   : > { %698 = vmatpush.bf16.msra.mxu1 %v1348_v5  ;;  %1457 = vmatpush.bf16.msra.mxu3 %v1348_v5  ;;  %v1116_v33 = vld [vmem:[%s1826_s27 + $0x18] sm:$0xf0]  ;;  %v1321_v34 = vld [vmem:[%s1826_s27 + $0x94] sm:$0xf]  ;;  %v1179_v37 = vor.u32 %v1322_v31, %v1178_v30  ;;  %v1122_v40 = vld [vmem:[%s1826_s27 + $0x20] sm:$0xf] }
  0x34   : > { %v1180_v35 = vld [vmem:[%s1826_s27 + $0x98] sm:$0xf0]  ;;  %v1119_v38 = vor.u32 %v1305_v32, %v1116_v33  ;;  %v1308_v41 = vld [vmem:[%s1826_s27 + $0x24] sm:$0xf0]  ;;  %v1186_v42 = vld [vmem:[%s1826_s27 + $0xa0] sm:$0xf] }
  0x35   : > { %v1183_v39 = vor.u32 %v1321_v34, %v1180_v35  ;;  %v1324_v43 = vld [vmem:[%s1826_s27 + $0xa4] sm:$0xf0]  ;;  %v1307_v44 = vld [vmem:[%s1826_s27 + $0x24] sm:$0xf]  ;;  %v1124_v45 = vld [vmem:[%s1826_s27 + $0x28] sm:$0xf0]  ;;  %v1123_v48 = vor.u32 %v1308_v41, %v1122_v40 }
  0x36   : > { %610 = vmatpush.bf16.msra.mxu0 %v1339_v6  ;;  %1450 = vmatpush.bf16.msra.mxu2 %v1339_v6  ;;  %v1323_v46 = vld [vmem:[%s1826_s27 + $0xa4] sm:$0xf]  ;;  %v1188_v47 = vld [vmem:[%s1826_s27 + $0xa8] sm:$0xf0]  ;;  %v1187_v49 = vor.u32 %v1324_v43, %v1186_v42  ;;  %v1127_v50 = vor.u32 %v1307_v44, %v1124_v45  ;;  %v1130_v52 = vld [vmem:[%s1826_s27 + $0x30] sm:$0xf] }
  0x37   : > { %699 = vmatpush.bf16.msra.mxu1 %v1347_v7  ;;  %1458 = vmatpush.bf16.msra.mxu3 %v1347_v7  ;;  %v1191_v51 = vor.u32 %v1323_v46, %v1188_v47  ;;  %v1310_v53 = vld [vmem:[%s1826_s27 + $0x34] sm:$0xf0]  ;;  %v1194_v54 = vld [vmem:[%s1826_s27 + $0xb0] sm:$0xf]  ;;  %v1309_v56 = vld [vmem:[%s1826_s27 + $0x34] sm:$0xf] }
  0x38   : > { %v1326_v55 = vld [vmem:[%s1826_s27 + $0xb4] sm:$0xf0]  ;;  %v1132_v57 = vld [vmem:[%s1826_s27 + $0x38] sm:$0xf0]  ;;  %v1325_v58 = vld [vmem:[%s1826_s27 + $0xb4] sm:$0xf]  ;;  %v1131_v60 = vor.u32 %v1310_v53, %v1130_v52 }
  0x39   : > { %v1196_v59 = vld [vmem:[%s1826_s27 + $0xb8] sm:$0xf0]  ;;  %v1195_v61 = vor.u32 %v1326_v55, %v1194_v54  ;;  %v1135_v62 = vor.u32 %v1309_v56, %v1132_v57  ;;  %v1138_v0 = vld [vmem:[%s1826_s27 + $0x40] sm:$0xf]  ;;  %v1312_v1 = vld [vmem:[%s1826_s27 + $0x44] sm:$0xf0] }
  0x3a   : > { %611 = vmatpush.bf16.msra.mxu0 %v1338_v8  ;;  %1451 = vmatpush.bf16.msra.mxu2 %v1338_v8  ;;  %v1199_v63 = vor.u32 %v1325_v58, %v1196_v59  ;;  %v1202_v2 = vld [vmem:[%s1826_s27 + $0xc0] sm:$0xf]  ;;  %v1328_v3 = vld [vmem:[%s1826_s27 + $0xc4] sm:$0xf0]  ;;  %v1311_v4 = vld [vmem:[%s1826_s27 + $0x44] sm:$0xf]  ;;  %v1139_v8 = vor.u32 %v1312_v1, %v1138_v0 }
  0x3b   : > { %700 = vmatpush.bf16.msra.mxu1 %v1346_v9  ;;  %1459 = vmatpush.bf16.msra.mxu3 %v1346_v9  ;;  %v1140_v5 = vld [vmem:[%s1826_s27 + $0x48] sm:$0xf0]  ;;  %v1327_v6 = vld [vmem:[%s1826_s27 + $0xc4] sm:$0xf]  ;;  %v1203_v9 = vor.u32 %v1328_v3, %v1202_v2  ;;  %v1313_v16 = vld [vmem:[%s1826_s27 + $0x54] sm:$0xf] }
  0x3c   : > { %v1204_v7 = vld [vmem:[%s1826_s27 + $0xc8] sm:$0xf0]  ;;  %v1148_v17 = vld [vmem:[%s1826_s27 + $0x58] sm:$0xf0]  ;;  %v1329_v18 = vld [vmem:[%s1826_s27 + $0xd4] sm:$0xf] }
  0x3d   : > { %v1212_v19 = vld [vmem:[%s1826_s27 + $0xd8] sm:$0xf0]  ;;  %v1151_v22 = vor.u32 %v1313_v16, %v1148_v17  ;;  %v1315_v28 = vld [vmem:[%s1826_s27 + $0x64] sm:$0xf]  ;;  %v1156_v29 = vld [vmem:[%s1826_s27 + $0x68] sm:$0xf0] }
  0x3e   : > { %612 = vmatpush.bf16.msra.mxu0 %v1337_v10  ;;  %1452 = vmatpush.bf16.msra.mxu2 %v1337_v10  ;;  %v1143_v10 = vor.u32 %v1311_v4, %v1140_v5  ;;  %v1215_v23 = vor.u32 %v1329_v18, %v1212_v19  ;;  %v1331_v30 = vld [vmem:[%s1826_s27 + $0xe4] sm:$0xf]  ;;  %v1220_v31 = vld [vmem:[%s1826_s27 + $0xe8] sm:$0xf0]  ;;  %v1159_v34 = vor.u32 %v1315_v28, %v1156_v29  ;;  %v1317_v40 = vld [vmem:[%s1826_s27 + $0x74] sm:$0xf] }
  0x3f   : > { %701 = vmatpush.bf16.msra.mxu1 %v1345_v11  ;;  %1460 = vmatpush.bf16.msra.mxu3 %v1345_v11  ;;  %v1207_v11 = vor.u32 %v1327_v6, %v1204_v7  ;;  %v1223_v35 = vor.u32 %v1331_v30, %v1220_v31  ;;  %v1164_v41 = vld [vmem:[%s1826_s27 + $0x78] sm:$0xf0]  ;;  %v1333_v42 = vld [vmem:[%s1826_s27 + $0xf4] sm:$0xf]  ;;  %v1909_v55 = vld [vmem:[%s2034_s3] ss:$0 sm:$0xff] }
  0x40   : > { %v1228_v43 = vld [vmem:[%s1826_s27 + $0xf8] sm:$0xf0]  ;;  %v1167_v46 = vor.u32 %v1317_v40, %v1164_v41 }
  0x41   : > { %v1231_v47 = vor.u32 %v1333_v42, %v1228_v43 }
  0x42   : > { %613 = vmatpush.bf16.msra.mxu0 %v1336_v12  ;;  %1453 = vmatpush.bf16.msra.mxu2 %v1336_v12  ;;  %v1146_v12 = vld [vmem:[%s1826_s27 + $0x50] sm:$0xf] }
  0x43   : > { %702 = vmatpush.bf16.msra.mxu1 %v1344_v13  ;;  %1461 = vmatpush.bf16.msra.mxu3 %v1344_v13  ;;  %v1314_v13 = vld [vmem:[%s1826_s27 + $0x54] sm:$0xf0] }
  0x44   : > { %v1147_v20 = vor.u32 %v1314_v13, %v1146_v12 }
  0x46   : > { %614 = vmatpush.bf16.msra.mxu0 %v1335_v14  ;;  %1454 = vmatpush.bf16.msra.mxu2 %v1335_v14  ;;  %v1210_v14 = vld [vmem:[%s1826_s27 + $0xd0] sm:$0xf] }
  0x47   : > { %703 = vmatpush.bf16.msra.mxu1 %v1343_v15  ;;  %1462 = vmatpush.bf16.msra.mxu3 %v1343_v15  ;;  %v1330_v15 = vld [vmem:[%s1826_s27 + $0xd4] sm:$0xf0] }
  0x48   : > { %v1211_v21 = vor.u32 %v1330_v15, %v1210_v14 }
  0x49   : > { %615 = vmatmul.bf16.vlgmr.msra.gmra.mxu0 %v1107_v24  ;;  %655 = vmatmul.bf16.vlgmr.msra.gmra.mxu2 %v1171_v25  ;;  %v1154_v24 = vld [vmem:[%s1826_s27 + $0x60] sm:$0xf]  ;;  %v1316_v25 = vld [vmem:[%s1826_s27 + $0x64] sm:$0xf0] }
  0x4a   : > { %704 = vmatmul.bf16.vlgmr.msra.gmra.mxu1 %v1111_v26  ;;  %744 = vmatmul.bf16.vlgmr.msra.gmra.mxu3 %v1175_v27  ;;  %v1218_v26 = vld [vmem:[%s1826_s27 + $0xe0] sm:$0xf]  ;;  %v1332_v27 = vld [vmem:[%s1826_s27 + $0xe4] sm:$0xf0]  ;;  %v1155_v32 = vor.u32 %v1316_v25, %v1154_v24 }
  0x4b   : > { %v1219_v33 = vor.u32 %v1332_v27, %v1218_v26 }
  0x59   : > { %620 = vmatmul.bf16.gmra.mxu0 %v1115_v36  ;;  %660 = vmatmul.bf16.gmra.mxu2 %v1179_v37  ;;  %v1162_v36 = vld [vmem:[%s1826_s27 + $0x70] sm:$0xf]  ;;  %v1318_v37 = vld [vmem:[%s1826_s27 + $0x74] sm:$0xf0] }
  0x5a   : > { %709 = vmatmul.bf16.gmra.mxu1 %v1119_v38  ;;  %749 = vmatmul.bf16.gmra.mxu3 %v1183_v39  ;;  %v1226_v38 = vld [vmem:[%s1826_s27 + $0xf0] sm:$0xf]  ;;  %v1334_v39 = vld [vmem:[%s1826_s27 + $0xf4] sm:$0xf0]  ;;  %v1163_v44 = vor.u32 %v1318_v37, %v1162_v36  ;;  %s1624_s27 = scalar_lea.hbm %s2035_s4, 1024 }
  0x5b   : > { %v1227_v45 = vor.u32 %v1334_v39, %v1226_v38  ;;  %p1626_p10 = scmp.lt.s32.totalorder %s1624_s27, %s1620_s8 }
  0x5d   : > { %p1627_p11 = por %p1626_p10, %p1625_p9 }
  0x5f   : > { %p1628_p12 = pnand %p1627_p11, %p1623_p8 }
  0x69   : > { %625 = vmatmul.bf16.gmra.mxu0 %v1123_v48  ;;  %665 = vmatmul.bf16.gmra.mxu2 %v1187_v49 }
  0x6a   : > { %714 = vmatmul.bf16.gmra.mxu1 %v1127_v50  ;;  %754 = vmatmul.bf16.gmra.mxu3 %v1191_v51  ;;  %v1903_v51 = vld [vmem:[%s2033_s2] ss:$0 sm:$0xff] }
  0x79   : > { %630 = vmatmul.bf16.gmra.mxu0 %v1131_v60  ;;  %670 = vmatmul.bf16.gmra.mxu2 %v1195_v61 }
  0x7a   : > { %719 = vmatmul.bf16.gmra.mxu1 %v1135_v62  ;;  %759 = vmatmul.bf16.gmra.mxu3 %v1199_v63 }
  0x89   : > { %635 = vmatmul.bf16.gmra.mxu0 %v1139_v8  ;;  %675 = vmatmul.bf16.gmra.mxu2 %v1203_v9 }
  0x8a   : > { %724 = vmatmul.bf16.gmra.mxu1 %v1143_v10  ;;  %764 = vmatmul.bf16.gmra.mxu3 %v1207_v11 }
  0x99   : > { %640 = vmatmul.bf16.gmra.mxu0 %v1147_v20  ;;  %680 = vmatmul.bf16.gmra.mxu2 %v1211_v21 }
  0x9a   : > { %729 = vmatmul.bf16.gmra.mxu1 %v1151_v22  ;;  %769 = vmatmul.bf16.gmra.mxu3 %v1215_v23 }
  0xa9   : > { %645 = vmatmul.bf16.gmra.mxu0 %v1155_v32  ;;  %685 = vmatmul.bf16.gmra.mxu2 %v1219_v33 }
  0xaa   : > { %734 = vmatmul.bf16.gmra.mxu1 %v1159_v34  ;;  %774 = vmatmul.bf16.gmra.mxu3 %v1223_v35 }
  0xb9   : > { %650 = vmatmul.bf16.gmra.mxu0 %v1163_v44  ;;  %690 = vmatmul.bf16.gmra.mxu2 %v1227_v45 }
  0xba   : > { %739 = vmatmul.bf16.gmra.mxu1 %v1167_v46  ;;  %779 = vmatmul.bf16.gmra.mxu3 %v1231_v47 }
  0xc6   : > { %v616_v48 = vpop.f32.mrf.mxu0 }
  0xc7   : > { %v705_v49 = vpop.f32.mrf.mxu1 }
  0xc8   : > { %v706_v50 = vadd.f32 %v705_v49, %v616_v48 }
  0xca   : > { %v789_v54 = vmul.f32 %v1903_v51, %v706_v50 }
  0xcc   : > { %v656_v52 = vpop.f32.mrf.mxu2  ;;  %v825_v60 = vadd.f32 %v1909_v55, %v789_v54 }
  0xcd   : > { %v745_v53 = vpop.f32.mrf.mxu3 }
  0xce   : > { %v618_v56 = vpop.f32.mrf.mxu0  ;;  %v746_v58 = vadd.f32 %v745_v53, %v656_v52  ;;  %v857_v2 = vmax.f32 %v825_v60, 0.0 }
  0xcf   : > { %v707_v57 = vpop.f32.mrf.mxu1 }
  0xd0   : > { %v708_v59 = vadd.f32 %v707_v57, %v618_v56  ;;  %v805_v62 = vmul.f32 %v1903_v51, %v746_v58 }
  0xd2   : > { %v790_v61 = vmul.f32 %v1903_v51, %v708_v59  ;;  %v841_v7 = vadd.f32 %v1909_v55, %v805_v62 }
  0xd4   : > { %v826_v63 = vadd.f32 %v1909_v55, %v790_v61  ;;  %v658_v0 = vpop.f32.mrf.mxu2  ;;  %v873_v12 = vmax.f32 %v841_v7, 0.0 }
  0xd5   : > { %v747_v1 = vpop.f32.mrf.mxu3 }
  0xd6   : > { %v858_v3 = vmax.f32 %v826_v63, 0.0  ;;  %v748_v4 = vadd.f32 %v747_v1, %v658_v0  ;;  %v621_v5 = vpop.f32.mrf.mxu0 }
  0xd7   : > { %v710_v6 = vpop.f32.mrf.mxu1 }
  0xd8   : > { %v1355_v8 = vpack.c.bf16 %v858_v3, %v857_v2  ;;  %v806_v9 = vmul.f32 %v1903_v51, %v748_v4  ;;  %v711_v11 = vadd.f32 %v710_v6, %v621_v5 }
  0xda   : > { %1356 = vst [vmem:[%s1918_s11] sm:$0xff] %v1355_v8   ;;  %v842_v10 = vadd.f32 %v1909_v55, %v806_v9  ;;  %v791_v17 = vmul.f32 %v1903_v51, %v711_v11 }
  0xdc   : > { %v874_v13 = vmax.f32 %v842_v10, 0.0  ;;  %v661_v14 = vpop.f32.mrf.mxu2  ;;  %v827_v22 = vadd.f32 %v1909_v55, %v791_v17 }
  0xdd   : > { %v750_v15 = vpop.f32.mrf.mxu3 }
  0xde   : > { %v1395_v16 = vpack.c.bf16 %v874_v13, %v873_v12  ;;  %v623_v18 = vpop.f32.mrf.mxu0  ;;  %v751_v20 = vadd.f32 %v750_v15, %v661_v14  ;;  %v859_v28 = vmax.f32 %v827_v22, 0.0 }
  0xdf   : > { %v712_v19 = vpop.f32.mrf.mxu1 }
  0xe0   : > { %1439 = vst [vmem:[%s1918_s11 + $0x40] sm:$0xff] %v1395_v16   ;;  %v713_v21 = vadd.f32 %v712_v19, %v623_v18  ;;  %v807_v24 = vmul.f32 %v1903_v51, %v751_v20 }
  0xe2   : > { %v792_v23 = vmul.f32 %v1903_v51, %v713_v21  ;;  %v843_v33 = vadd.f32 %v1909_v55, %v807_v24 }
  0xe4   : > { %v828_v25 = vadd.f32 %v1909_v55, %v792_v23  ;;  %v663_v26 = vpop.f32.mrf.mxu2  ;;  %v875_v38 = vmax.f32 %v843_v33, 0.0 }
  0xe5   : > { %v752_v27 = vpop.f32.mrf.mxu3 }
  0xe6   : > { %v860_v29 = vmax.f32 %v828_v25, 0.0  ;;  %v753_v30 = vadd.f32 %v752_v27, %v663_v26  ;;  %v626_v31 = vpop.f32.mrf.mxu0 }
  0xe7   : > { %v715_v32 = vpop.f32.mrf.mxu1 }
  0xe8   : > { %v1360_v34 = vpack.c.bf16 %v860_v29, %v859_v28  ;;  %v808_v35 = vmul.f32 %v1903_v51, %v753_v30  ;;  %v716_v37 = vadd.f32 %v715_v32, %v626_v31 }
  0xea   : > { %1432 = vst [vmem:[%s1918_s11 + $0x8] sm:$0xff] %v1360_v34   ;;  %v844_v36 = vadd.f32 %v1909_v55, %v808_v35  ;;  %v793_v43 = vmul.f32 %v1903_v51, %v716_v37 }
  0xec   : > { %v876_v39 = vmax.f32 %v844_v36, 0.0  ;;  %v666_v40 = vpop.f32.mrf.mxu2  ;;  %v829_v48 = vadd.f32 %v1909_v55, %v793_v43 }
  0xed   : > { %v755_v41 = vpop.f32.mrf.mxu3 }
  0xee   : > { %v1400_v42 = vpack.c.bf16 %v876_v39, %v875_v38  ;;  %v628_v44 = vpop.f32.mrf.mxu0  ;;  %v756_v46 = vadd.f32 %v755_v41, %v666_v40  ;;  %v861_v56 = vmax.f32 %v829_v48, 0.0 }
  0xef   : > { %v717_v45 = vpop.f32.mrf.mxu1 }
  0xf0   : > { %1440 = vst [vmem:[%s1918_s11 + $0x48] sm:$0xff] %v1400_v42   ;;  %v718_v47 = vadd.f32 %v717_v45, %v628_v44  ;;  %v809_v50 = vmul.f32 %v1903_v51, %v756_v46 }
  0xf2   : > { %v794_v49 = vmul.f32 %v1903_v51, %v718_v47  ;;  %v845_v61 = vadd.f32 %v1909_v55, %v809_v50 }
  0xf4   : > { %v830_v52 = vadd.f32 %v1909_v55, %v794_v49  ;;  %v668_v53 = vpop.f32.mrf.mxu2  ;;  %v877_v2 = vmax.f32 %v845_v61, 0.0 }
  0xf5   : > { %v757_v54 = vpop.f32.mrf.mxu3 }
  0xf6   : > { %v862_v57 = vmax.f32 %v830_v52, 0.0  ;;  %v758_v58 = vadd.f32 %v757_v54, %v668_v53  ;;  %v631_v59 = vpop.f32.mrf.mxu0 }
  0xf7   : > { %v720_v60 = vpop.f32.mrf.mxu1 }
  0xf8   : > { %v1365_v62 = vpack.c.bf16 %v862_v57, %v861_v56  ;;  %v810_v63 = vmul.f32 %v1903_v51, %v758_v58  ;;  %v721_v1 = vadd.f32 %v720_v60, %v631_v59 }
  0xfa   : > { %1433 = vst [vmem:[%s1918_s11 + $0x10] sm:$0xff] %v1365_v62   ;;  %v846_v0 = vadd.f32 %v1909_v55, %v810_v63  ;;  %v795_v7 = vmul.f32 %v1903_v51, %v721_v1 }
  0xfc   : > { %v878_v3 = vmax.f32 %v846_v0, 0.0  ;;  %v671_v4 = vpop.f32.mrf.mxu2  ;;  %v831_v12 = vadd.f32 %v1909_v55, %v795_v7 }
  0xfd   : > { %v760_v5 = vpop.f32.mrf.mxu3 }
  0xfe   : > { %v1405_v6 = vpack.c.bf16 %v878_v3, %v877_v2  ;;  %v633_v8 = vpop.f32.mrf.mxu0  ;;  %v761_v10 = vadd.f32 %v760_v5, %v671_v4  ;;  %v863_v18 = vmax.f32 %v831_v12, 0.0 }
  0xff   : > { %v722_v9 = vpop.f32.mrf.mxu1 }
 0x100   : > { %1441 = vst [vmem:[%s1918_s11 + $0x50] sm:$0xff] %v1405_v6   ;;  %v723_v11 = vadd.f32 %v722_v9, %v633_v8  ;;  %v811_v14 = vmul.f32 %v1903_v51, %v761_v10 }
 0x102   : > { %v796_v13 = vmul.f32 %v1903_v51, %v723_v11  ;;  %v847_v23 = vadd.f32 %v1909_v55, %v811_v14 }
 0x104   : > { %v832_v15 = vadd.f32 %v1909_v55, %v796_v13  ;;  %v673_v16 = vpop.f32.mrf.mxu2  ;;  %v879_v28 = vmax.f32 %v847_v23, 0.0 }
 0x105   : > { %v762_v17 = vpop.f32.mrf.mxu3 }
 0x106   : > { %v864_v19 = vmax.f32 %v832_v15, 0.0  ;;  %v763_v20 = vadd.f32 %v762_v17, %v673_v16  ;;  %v636_v21 = vpop.f32.mrf.mxu0 }
 0x107   : > { %v725_v22 = vpop.f32.mrf.mxu1 }
 0x108   : > { %v1370_v24 = vpack.c.bf16 %v864_v19, %v863_v18  ;;  %v812_v25 = vmul.f32 %v1903_v51, %v763_v20  ;;  %v726_v27 = vadd.f32 %v725_v22, %v636_v21 }
 0x10a   : > { %1434 = vst [vmem:[%s1918_s11 + $0x18] sm:$0xff] %v1370_v24   ;;  %v848_v26 = vadd.f32 %v1909_v55, %v812_v25  ;;  %v797_v33 = vmul.f32 %v1903_v51, %v726_v27 }
 0x10c   : > { %v880_v29 = vmax.f32 %v848_v26, 0.0  ;;  %v676_v30 = vpop.f32.mrf.mxu2  ;;  %v833_v38 = vadd.f32 %v1909_v55, %v797_v33 }
 0x10d   : > { %v765_v31 = vpop.f32.mrf.mxu3 }
 0x10e   : > { %v1410_v32 = vpack.c.bf16 %v880_v29, %v879_v28  ;;  %v638_v34 = vpop.f32.mrf.mxu0  ;;  %v766_v36 = vadd.f32 %v765_v31, %v676_v30  ;;  %v865_v44 = vmax.f32 %v833_v38, 0.0 }
 0x10f   : > { %v727_v35 = vpop.f32.mrf.mxu1 }
 0x110   : > { %1442 = vst [vmem:[%s1918_s11 + $0x58] sm:$0xff] %v1410_v32   ;;  %v728_v37 = vadd.f32 %v727_v35, %v638_v34  ;;  %v813_v40 = vmul.f32 %v1903_v51, %v766_v36 }
 0x112   : > { %v798_v39 = vmul.f32 %v1903_v51, %v728_v37  ;;  %v849_v49 = vadd.f32 %v1909_v55, %v813_v40 }
 0x114   : > { %v834_v41 = vadd.f32 %v1909_v55, %v798_v39  ;;  %v678_v42 = vpop.f32.mrf.mxu2  ;;  %v881_v56 = vmax.f32 %v849_v49, 0.0 }
 0x115   : > { %v767_v43 = vpop.f32.mrf.mxu3 }
 0x116   : > { %v866_v45 = vmax.f32 %v834_v41, 0.0  ;;  %v768_v46 = vadd.f32 %v767_v43, %v678_v42  ;;  %v641_v47 = vpop.f32.mrf.mxu0 }
 0x117   : > { %v730_v48 = vpop.f32.mrf.mxu1 }
 0x118   : > { %v1375_v50 = vpack.c.bf16 %v866_v45, %v865_v44  ;;  %v814_v52 = vmul.f32 %v1903_v51, %v768_v46  ;;  %v731_v54 = vadd.f32 %v730_v48, %v641_v47 }
 0x11a   : > { %1435 = vst [vmem:[%s1918_s11 + $0x20] sm:$0xff] %v1375_v50   ;;  %v850_v53 = vadd.f32 %v1909_v55, %v814_v52  ;;  %v799_v61 = vmul.f32 %v1903_v51, %v731_v54 }
 0x11c   : > { %v882_v57 = vmax.f32 %v850_v53, 0.0  ;;  %v681_v58 = vpop.f32.mrf.mxu2  ;;  %v835_v2 = vadd.f32 %v1909_v55, %v799_v61 }
 0x11d   : > { %v770_v59 = vpop.f32.mrf.mxu3 }
 0x11e   : > { %v1415_v60 = vpack.c.bf16 %v882_v57, %v881_v56  ;;  %v643_v62 = vpop.f32.mrf.mxu0  ;;  %v771_v0 = vadd.f32 %v770_v59, %v681_v58  ;;  %v867_v8 = vmax.f32 %v835_v2, 0.0 }
 0x11f   : > { %v732_v63 = vpop.f32.mrf.mxu1 }
 0x120   : > { %1443 = vst [vmem:[%s1918_s11 + $0x60] sm:$0xff] %v1415_v60   ;;  %v733_v1 = vadd.f32 %v732_v63, %v643_v62  ;;  %v815_v4 = vmul.f32 %v1903_v51, %v771_v0 }
 0x122   : > { %v800_v3 = vmul.f32 %v1903_v51, %v733_v1  ;;  %v851_v13 = vadd.f32 %v1909_v55, %v815_v4 }
 0x124   : > { %v836_v5 = vadd.f32 %v1909_v55, %v800_v3  ;;  %v683_v6 = vpop.f32.mrf.mxu2  ;;  %v883_v18 = vmax.f32 %v851_v13, 0.0 }
 0x125   : > { %v772_v7 = vpop.f32.mrf.mxu3 }
 0x126   : > { %v868_v9 = vmax.f32 %v836_v5, 0.0  ;;  %v773_v10 = vadd.f32 %v772_v7, %v683_v6  ;;  %v646_v11 = vpop.f32.mrf.mxu0 }
 0x127   : > { %v735_v12 = vpop.f32.mrf.mxu1 }
 0x128   : > { %v1380_v14 = vpack.c.bf16 %v868_v9, %v867_v8  ;;  %v816_v15 = vmul.f32 %v1903_v51, %v773_v10  ;;  %v736_v17 = vadd.f32 %v735_v12, %v646_v11 }
 0x12a   : > { %1436 = vst [vmem:[%s1918_s11 + $0x28] sm:$0xff] %v1380_v14   ;;  %v852_v16 = vadd.f32 %v1909_v55, %v816_v15  ;;  %v801_v23 = vmul.f32 %v1903_v51, %v736_v17 }
 0x12c   : > { %v884_v19 = vmax.f32 %v852_v16, 0.0  ;;  %v686_v20 = vpop.f32.mrf.mxu2  ;;  %v837_v28 = vadd.f32 %v1909_v55, %v801_v23 }
 0x12d   : > { %v775_v21 = vpop.f32.mrf.mxu3 }
 0x12e   : > { %v1420_v22 = vpack.c.bf16 %v884_v19, %v883_v18  ;;  %v648_v24 = vpop.f32.mrf.mxu0  ;;  %v776_v26 = vadd.f32 %v775_v21, %v686_v20  ;;  %v869_v34 = vmax.f32 %v837_v28, 0.0 }
 0x12f   : > { %v737_v25 = vpop.f32.mrf.mxu1 }
 0x130   : > { %1444 = vst [vmem:[%s1918_s11 + $0x68] sm:$0xff] %v1420_v22   ;;  %v738_v27 = vadd.f32 %v737_v25, %v648_v24  ;;  %v817_v30 = vmul.f32 %v1903_v51, %v776_v26 }
 0x132   : > { %v802_v29 = vmul.f32 %v1903_v51, %v738_v27  ;;  %v853_v39 = vadd.f32 %v1909_v55, %v817_v30 }
 0x134   : > { %v838_v31 = vadd.f32 %v1909_v55, %v802_v29  ;;  %v688_v32 = vpop.f32.mrf.mxu2  ;;  %v885_v44 = vmax.f32 %v853_v39, 0.0 }
 0x135   : > { %v777_v33 = vpop.f32.mrf.mxu3 }
 0x136   : > { %v870_v35 = vmax.f32 %v838_v31, 0.0  ;;  %v778_v36 = vadd.f32 %v777_v33, %v688_v32  ;;  %v651_v37 = vpop.f32.mrf.mxu0 }
 0x137   : > { %v740_v38 = vpop.f32.mrf.mxu1 }
 0x138   : > { %v1385_v40 = vpack.c.bf16 %v870_v35, %v869_v34  ;;  %v818_v41 = vmul.f32 %v1903_v51, %v778_v36  ;;  %v741_v43 = vadd.f32 %v740_v38, %v651_v37 }
 0x13a   : > { %1437 = vst [vmem:[%s1918_s11 + $0x30] sm:$0xff] %v1385_v40   ;;  %v854_v42 = vadd.f32 %v1909_v55, %v818_v41  ;;  %v803_v49 = vmul.f32 %v1903_v51, %v741_v43 }
 0x13c   : > { %v886_v45 = vmax.f32 %v854_v42, 0.0  ;;  %v691_v46 = vpop.f32.mrf.mxu2  ;;  %v839_v56 = vadd.f32 %v1909_v55, %v803_v49 }
 0x13d   : > { %v780_v47 = vpop.f32.mrf.mxu3 }
 0x13e   : > { %v1425_v48 = vpack.c.bf16 %v886_v45, %v885_v44  ;;  %v653_v50 = vpop.f32.mrf.mxu0  ;;  %v781_v53 = vadd.f32 %v780_v47, %v691_v46  ;;  %v871_v62 = vmax.f32 %v839_v56, 0.0 }
 0x13f   : > { %v742_v52 = vpop.f32.mrf.mxu1 }
 0x140   : > { %1445 = vst [vmem:[%s1918_s11 + $0x70] sm:$0xff] %v1425_v48   ;;  %v743_v54 = vadd.f32 %v742_v52, %v653_v50  ;;  %v819_v58 = vmul.f32 %v1903_v51, %v781_v53 }
 0x142   : > { %v804_v57 = vmul.f32 %v1903_v51, %v743_v54  ;;  %v855_v1 = vadd.f32 %v1909_v55, %v819_v58 }
 0x144   : > { %v840_v59 = vadd.f32 %v1909_v55, %v804_v57  ;;  %v693_v60 = vpop.f32.mrf.mxu2  ;;  %v887_v5 = vmax.f32 %v855_v1, 0.0 }
 0x145   : > { %v782_v61 = vpop.f32.mrf.mxu3 }
 0x146   : > { %v872_v63 = vmax.f32 %v840_v59, 0.0  ;;  %v783_v0 = vadd.f32 %v782_v61, %v693_v60 }
 0x148   : > { %v1390_v2 = vpack.c.bf16 %v872_v63, %v871_v62  ;;  %v820_v3 = vmul.f32 %v1903_v51, %v783_v0 }
 0x14a   : > { %1438 = vst [vmem:[%s1918_s11 + $0x38] sm:$0xff] %v1390_v2   ;;  %v856_v4 = vadd.f32 %v1909_v55, %v820_v3 }
 0x14c   : > { %v888_v6 = vmax.f32 %v856_v4, 0.0 }
 0x14e   : > { %v1430_v7 = vpack.c.bf16 %v888_v6, %v887_v5 }
 0x150   : > { %1446 = vst [vmem:[%s1918_s11 + $0x78] sm:$0xff] %v1430_v7  }
 0x151   : > { %1631 = shalt.err (!%p1628_p12)
}
 0x152   : > { %s1697_s10 = smov 64   ;;  %s1698_s25 = smov 4  }
 0x153   : > { %1469 = dma.vmem_to_hbm [thread:$0]  (%p1802_p3), %s968_s18, 2048, %s970_s6, %s954_s7, %s1697_s10, %s1697_s10, %s1698_s25  }
 0x154 PF: > { %p1486_p13 = scmp.ge.s32.totalorder %s1690_s20, 2  ;;  %s984_s30 = sand.u32 1, %s1670_s15  }
 0x155   : > { %s985_s9 = scalar_lea.sflag [#allocation4], %s984_s30 }
 0x156   : > { %p1480_p0 = pnand %p1486_p13, %p1773_p6 }
 0x158   : > { %p1481_p5 = pneg %p1480_p0 }
 0x15a   : > { %1665 = dma.done.wait (%p1481_p5), %s985_s9, 2048  }
 0x15b   : > { %1667 = vsyncadd (%p1481_p5), %s985_s9, 4294965248  ;;  %s21_s20 = sadd.s32 1, %s1690_s20   ;;  %s2047_s12 = sld [smem:[#allocation11_spill]] }
 0x15c   : > { %p18_p7 = scmp.ge.s32.totalorder %s21_s20, 10   ;;  %s2048_s15 = smov %s1674_s16 }
 0x15d   : > { %s2049_s16 = smov %s1678_s17  ;;  %s2050_s17 = smov %s1811_s22 }
 0x15e   : > { %s2051_s18 = smov %s1686_s19  ;;  %20 = sbr.rel (!%p18_p7) target bundleno = 9 (0x9), region = 92 }
 0x161   : > { %s2052_s19 = smov %s2047_s12 }
 0x163   :  { %991 = vsyncpa [#allocation3], 1 }
 0x164   :  { %993 = vsyncpa [#allocation3 + $0x1], 1 }
 0x165   :  { %994 = vsyncpa [#allocation6], 1 }
 0x166   :  { %995 = vsyncpa [#allocation4], 1 }
 0x167   :  { %997 = vsyncpa [#allocation4 + $0x1], 1 }

</bundles_post_ra>
